<compile_context>
chip_gen: v5e
topology: v5e:2x2
jax: 0.10.0
libtpu: 0.0.40
codegen_flags: <defaults>
</compile_context>

<pallas_src>
import jax
import jax.numpy as jnp
from jax.experimental import pallas as pl
from jax.experimental.pallas import tpu as pltpu


def policy_kernel(x_ref, w1_ref, b1_ref, w2_ref, b2_ref, out_ref):
    x = x_ref[...]

    # Hidden layer: Linear (MXU, f32 accumulate) + ReLU (VPU).
    h = jnp.dot(x, w1_ref[...], preferred_element_type=jnp.float32) + b1_ref[...]
    h = jnp.maximum(h, 0.0)

    # Output layer: Linear. Output columns are padded to a full 128-lane width; padded
    # columns carry bias -1e30 so softmax sends them to exactly 0.
    logits = jnp.dot(h, w2_ref[...], preferred_element_type=jnp.float32) + b2_ref[...]

    # Numerically stable softmax along the last axis; exact division (review: approx
    # reciprocal bought nothing here and broke sum-to-1).
    m = jnp.max(logits, axis=-1, keepdims=True)
    e = jnp.exp(logits - m)
    denom = jnp.sum(e, axis=-1, keepdims=True)
    out_ref[...] = (e / denom).astype(out_ref.dtype)


def policy_network_forward(x, w1, b1, w2, b2, *, tile_m=4096):
    """x: [B, state_dim] f32 -> probs: [B, action_dim] f32."""
    B, state_dim = x.shape
    hidden = w1.shape[1]
    action_dim = w2.shape[1]

    # ---- lane-dense output: pad action dim up to a multiple of 128 lanes ----
    out_cols = max(128, pl.cdiv(action_dim, 128) * 128)
    if out_cols != action_dim:
        w2 = jnp.pad(w2, ((0, 0), (0, out_cols - action_dim)))
        b2 = jnp.pad(b2, ((0, 0), (0, out_cols - action_dim)), constant_values=-1e30)

    # ---- batch tile selection ----
    pad8 = pl.cdiv(B, 8) * 8                       # minimum f32-sublane-aligned batch
    tile = max(8, (min(int(tile_m), pad8) // 8) * 8)
    # Keep >= 2 grid steps when the batch allows it so v7x's 2 TensorCores both get work.
    if pad8 // tile < 2 and pad8 >= 16:
        tile = pl.cdiv(pl.cdiv(pad8, 2), 8) * 8

    # VMEM budget: approx live bytes per batch row (double-buffered x/out tiles + f32
    # intermediates), sized with headroom against v7x's 64 MiB physical VMEM per TC.
    per_row = 4 * (2 * (state_dim + out_cols) + 2 * hidden + 3 * out_cols)
    weights_bytes = 4 * (state_dim * hidden + hidden + hidden * out_cols + out_cols)
    vmem_budget = 48 * 1024 * 1024
    max_tile = max(8, ((vmem_budget - 2 * weights_bytes) // per_row // 8) * 8)
    tile = min(tile, max_tile)

    pad_b = pl.cdiv(B, tile) * tile
    if pad_b != B:
        x = jnp.pad(x, ((0, pad_b - B), (0, 0)))
    grid = (pad_b // tile,)

    # Raise scoped VMEM so big tiles compile on v5e (16 MiB default) while staying well
    # under v7x's 64 MiB physical VMEM.
    vmem_limit = int(min(max(tile * per_row + 2 * weights_bytes + (2 << 20), 32 << 20),
                         56 << 20))

    flops = 2 * pad_b * state_dim * hidden + 2 * pad_b * hidden * out_cols
    transcendentals = pad_b * out_cols                       # exp per (padded) logit
    bytes_accessed = 4 * (pad_b * state_dim + state_dim * hidden + hidden
                          + hidden * out_cols + out_cols + pad_b * out_cols)

    out = pl.pallas_call(
        policy_kernel,
        out_shape=jax.ShapeDtypeStruct((pad_b, out_cols), jnp.float32),
        grid_spec=pltpu.PrefetchScalarGridSpec(
            num_scalar_prefetch=0,
            grid=grid,
            in_specs=[
                # Streamed batch tiles of x.
                pl.BlockSpec((tile, state_dim), lambda i: (i, 0)),
                # Weights/biases: constant index_map -> fetched once, VMEM-resident.
                pl.BlockSpec((state_dim, hidden), lambda i: (0, 0)),
                pl.BlockSpec((1, hidden), lambda i: (0, 0)),
                pl.BlockSpec((hidden, out_cols), lambda i: (0, 0)),
                pl.BlockSpec((1, out_cols), lambda i: (0, 0)),
            ],
            out_specs=pl.BlockSpec((tile, out_cols), lambda i: (i, 0)),
        ),
        compiler_params=pltpu.CompilerParams(
            dimension_semantics=("parallel",),   # lets v7x shard batch tiles across its 2 TCs
            vmem_limit_bytes=vmem_limit,
        ),
        cost_estimate=pl.CostEstimate(
            flops=flops,
            transcendentals=transcendentals,
            bytes_accessed=bytes_accessed,
        ),
    )(x, w1, b1, w2, b2)

    return out[:B, :action_dim]


def init_params(key, state_dim, action_dim, hidden=256):
    """Deterministic init mimicking PyTorch nn.Linear default (uniform +-1/sqrt(fan_in))."""
    k1, k2, k3, k4 = jax.random.split(key, 4)
    lim1 = 1.0 / jnp.sqrt(jnp.float32(state_dim))
    lim2 = 1.0 / jnp.sqrt(jnp.float32(hidden))
    w1 = jax.random.uniform(k1, (state_dim, hidden), jnp.float32, -lim1, lim1)
    b1 = jax.random.uniform(k2, (1, hidden), jnp.float32, -lim1, lim1)
    w2 = jax.random.uniform(k3, (hidden, action_dim), jnp.float32, -lim2, lim2)
    b2 = jax.random.uniform(k4, (1, action_dim), jnp.float32, -lim2, lim2)
    return w1, b1, w2, b2


if __name__ == "__main__":
    state_dim, action_dim = 16, 4
    batch = 50  # not a multiple of 8 -> exercises padding; default tiling yields a 2-step grid

    key = jax.random.PRNGKey(0)
    kx, kp = jax.random.split(key)
    x = jax.random.normal(kx, (batch, state_dim), jnp.float32)
    w1, b1, w2, b2 = init_params(kp, state_dim, action_dim)

    probs = policy_network_forward(x, w1, b1, w2, b2)
    probs = jax.block_until_ready(probs)

    # Reference check in plain JAX (highest-precision dots to avoid default-bf16 noise).
    h_ref = jnp.maximum(jnp.dot(x, w1, precision=jax.lax.Precision.HIGHEST) + b1, 0.0)
    logits_ref = jnp.dot(h_ref, w2, precision=jax.lax.Precision.HIGHEST) + b2
    ref = jax.nn.softmax(logits_ref, axis=-1)

    assert probs.shape == (batch, action_dim)
    max_err = float(jnp.max(jnp.abs(probs - ref)))
    assert jnp.allclose(probs, ref, atol=2e-3, rtol=2e-3), max_err
    sum_err = float(jnp.max(jnp.abs(jnp.sum(probs, axis=-1) - 1.0)))
    assert jnp.allclose(jnp.sum(probs, axis=-1), 1.0, atol=1e-4), sum_err

    print("KERNEL_OK")
</pallas_src>

<mosaic_0001>
module attributes {stable_mosaic.version = 11 : i64} {
  func.func @policy_kernel(%arg0: i32, %arg1: memref<32x16xf32, #tpu.memory_space<vmem>>, %arg2: memref<16x256xf32, #tpu.memory_space<vmem>>, %arg3: memref<1x256xf32, #tpu.memory_space<vmem>>, %arg4: memref<256x128xf32, #tpu.memory_space<vmem>>, %arg5: memref<1x128xf32, #tpu.memory_space<vmem>>, %arg6: memref<32x128xf32, #tpu.memory_space<vmem>>) attributes {dimension_semantics = [#tpu.dimension_semantics<parallel>], iteration_bounds = array<i64: 2>, scalar_prefetch = 0 : i64, scratch_operands = 0 : i64, tpu.core_type = #tpu.core_type<tc>, window_params = [{transform_indices = @transform_0, window_bounds = array<i64: 32, 16>}, {pipeline_mode = #tpu.pipeline_mode<synchronous>, transform_indices = @transform_1, window_bounds = array<i64: 16, 256>}, {pipeline_mode = #tpu.pipeline_mode<synchronous>, transform_indices = @transform_2, window_bounds = array<i64: 1, 256>}, {pipeline_mode = #tpu.pipeline_mode<synchronous>, transform_indices = @transform_3, window_bounds = array<i64: 256, 128>}, {pipeline_mode = #tpu.pipeline_mode<synchronous>, transform_indices = @transform_4, window_bounds = array<i64: 1, 128>}, {transform_indices = @transform_5, window_bounds = array<i64: 32, 128>}]} {
    %c0 = arith.constant 0 : index
    %c0_0 = arith.constant 0 : index
    %0 = vector.load %arg1[%c0, %c0_0] : memref<32x16xf32, #tpu.memory_space<vmem>>, vector<32x16xf32>
    %c0_1 = arith.constant 0 : index
    %c0_2 = arith.constant 0 : index
    %1 = vector.load %arg2[%c0_1, %c0_2] : memref<16x256xf32, #tpu.memory_space<vmem>>, vector<16x256xf32>
    %cst = arith.constant dense<0.000000e+00> : vector<32x256xf32>
    %2 = tpu.matmul %0, %1, %cst {dimension_numbers = #tpu.dot_dimension_numbers<[1], [0], [0], [1], [0, 0, 1, 1], [], []>} : vector<32x16xf32>, vector<16x256xf32>, vector<32x256xf32> -> vector<32x256xf32>
    %c0_3 = arith.constant 0 : index
    %c0_4 = arith.constant 0 : index
    %3 = vector.load %arg3[%c0_3, %c0_4] : memref<1x256xf32, #tpu.memory_space<vmem>>, vector<1x256xf32>
    %4 = vector.broadcast %3 : vector<1x256xf32> to vector<32x256xf32>
    %5 = arith.addf %2, %4 : vector<32x256xf32>
    %cst_5 = arith.constant 0.000000e+00 : f32
    %6 = vector.broadcast %cst_5 : f32 to vector<32x256xf32>
    %7 = arith.maximumf %5, %6 : vector<32x256xf32>
    %c0_6 = arith.constant 0 : index
    %c0_7 = arith.constant 0 : index
    %8 = vector.load %arg4[%c0_6, %c0_7] : memref<256x128xf32, #tpu.memory_space<vmem>>, vector<256x128xf32>
    %cst_8 = arith.constant dense<0.000000e+00> : vector<32x128xf32>
    %9 = tpu.matmul %7, %8, %cst_8 {dimension_numbers = #tpu.dot_dimension_numbers<[1], [0], [0], [1], [0, 0, 1, 1], [], []>} : vector<32x256xf32>, vector<256x128xf32>, vector<32x128xf32> -> vector<32x128xf32>
    %c0_9 = arith.constant 0 : index
    %c0_10 = arith.constant 0 : index
    %10 = vector.load %arg5[%c0_9, %c0_10] : memref<1x128xf32, #tpu.memory_space<vmem>>, vector<1x128xf32>
    %11 = vector.broadcast %10 : vector<1x128xf32> to vector<32x128xf32>
    %12 = arith.addf %9, %11 : vector<32x128xf32>
    %cst_11 = arith.constant dense<0xFF800000> : vector<32xf32>
    %13 = vector.multi_reduction <maximumf>, %12, %cst_11 [1] : vector<32x128xf32> to vector<32xf32>
    %14 = vector.shape_cast %13 : vector<32xf32> to vector<32x1xf32>
    %15 = vector.broadcast %14 : vector<32x1xf32> to vector<32x128xf32>
    %16 = arith.subf %12, %15 : vector<32x128xf32>
    %17 = math.exp %16 : vector<32x128xf32>
    %cst_12 = arith.constant dense<0.000000e+00> : vector<32xf32>
    %18 = vector.multi_reduction <add>, %17, %cst_12 [1] : vector<32x128xf32> to vector<32xf32>
    %19 = vector.shape_cast %18 : vector<32xf32> to vector<32x1xf32>
    %20 = vector.broadcast %19 : vector<32x1xf32> to vector<32x128xf32>
    %21 = arith.divf %17, %20 : vector<32x128xf32>
    %c0_13 = arith.constant 0 : index
    %c0_14 = arith.constant 0 : index
    %22 = vector.load %arg6[%c0_13, %c0_14] : memref<32x128xf32, #tpu.memory_space<vmem>>, vector<32x128xf32>
    tpu.vector_store %arg6[%c0_13, %c0_14], %21 {strides = array<i32>} : memref<32x128xf32, #tpu.memory_space<vmem>>, vector<32x128xf32>,
    return
  }
  func.func @transform_0(%arg0: i32) -> (i32, i32) {
    %c0_i32 = arith.constant 0 : i32
    %c0_i32_0 = arith.constant 0 : i32
    return %arg0, %c0_i32 : i32, i32
  }
  func.func @transform_1(%arg0: i32) -> (i32, i32) {
    %c0_i32 = arith.constant 0 : i32
    %c0_i32_0 = arith.constant 0 : i32
    %c0_i32_1 = arith.constant 0 : i32
    return %c0_i32, %c0_i32_0 : i32, i32
  }
  func.func @transform_2(%arg0: i32) -> (i32, i32) {
    %c0_i32 = arith.constant 0 : i32
    %c0_i32_0 = arith.constant 0 : i32
    %c0_i32_1 = arith.constant 0 : i32
    return %c0_i32, %c0_i32_0 : i32, i32
  }
  func.func @transform_3(%arg0: i32) -> (i32, i32) {
    %c0_i32 = arith.constant 0 : i32
    %c0_i32_0 = arith.constant 0 : i32
    %c0_i32_1 = arith.constant 0 : i32
    return %c0_i32, %c0_i32_0 : i32, i32
  }
  func.func @transform_4(%arg0: i32) -> (i32, i32) {
    %c0_i32 = arith.constant 0 : i32
    %c0_i32_0 = arith.constant 0 : i32
    %c0_i32_1 = arith.constant 0 : i32
    return %c0_i32, %c0_i32_0 : i32, i32
  }
  func.func @transform_5(%arg0: i32) -> (i32, i32) {
    %c0_i32 = arith.constant 0 : i32
    %c0_i32_0 = arith.constant 0 : i32
    return %arg0, %c0_i32 : i32, i32
  }
}

</mosaic_0001>

<bundles_post_ra>
// kernel: tpu_custom_call.1
= control target key start
LH: loop header
LB: loop body
LE: loop exit
PB: predicated region body
PF: predicated region fallthrough
CT: control target
= control target key end

     0   :  { %10 = vsyncpa [#allocation3], 0  ;;  %s1016_s0 = inlined_call_operand.vmem [shape: f32[64,16], index: 0, kind: input, shape index: {}]   ;;  %s1017_s1 = inlined_call_operand.vmem [shape: f32[16,256], index: 1, kind: input, shape index: {}]   ;;  %s1018_s2 = inlined_call_operand.vmem [shape: f32[1,256], index: 2, kind: input, shape index: {}]   ;;  %s1019_s3 = inlined_call_operand.hbm [shape: f32[256,128], index: 3, kind: input, shape index: {}]   ;;  %s1020_s4 = inlined_call_operand.vmem [shape: f32[1,128], index: 4, kind: input, shape index: {}]   ;;  %s1021_s5 = inlined_call_operand.hbm [shape: f32[64,128], index: 5, kind: output, shape index: {}]  }
   0x1   :  { %11 = vsyncpa [#allocation4], 0 }
   0x2   :  { %13 = vsyncpa [#allocation4 + $0x1], 0  ;;  %s871_s18 = smov 0   ;;  %s873_s19 = smov 0  }
   0x3   :  { %s875_s20 = smov 0   ;;  %s877_s21 = smov 0  }
   0x4 LB: > { %s892_s22 = sadd.s32 4294967295, %s834_s21   ;;  %s612_s23 = sadd.s32 4294967294, %s834_s21   ;;  %s834_s21 = sphi %s877_s21, %s1027_s21   ;;  %s830_s20 = sphi %s875_s20, %s1026_s20   ;;  %s826_s19 = sphi %s873_s19, %s1025_s19   ;;  %s822_s18 = sphi %s871_s18, %s1024_s18  }
   0x5   : > { %s896_s24 = sadd.s32 1, %s834_s21   ;;  %s136_s25 = sadd.s32 1, %s830_s20 }
   0x6   : > { %s133_s26 = ssub.s32 %s834_s21, %s896_s24  ;;  %p146_p0 = scmp.ne.s32.totalorder %s830_s20, %s826_s19 }
   0x7   : > { %p134_p1 = scmp.eq.s32.totalorder %s133_s26, 0  ;;  %p147_p2 = scmp.eq.s32.totalorder %s892_s22, 1 }
   0x8   : > { %p152_p3 = scmp.ne.s32.totalorder %s826_s19, %s822_s18  ;;  %p153_p4 = scmp.eq.s32.totalorder %s612_s23, 1 }
   0x9   : > { %s907_s27 = scalar_select %p134_p1, %s830_s20, %s136_s25  }
   0xa   : > { %p909_p5 = por %p147_p2, %p146_p0  ;;  %p913_p6 = por %p153_p4, %p152_p3 }
   0xb   : > { %p613_p7 = scmp.ge.s32.totalorder %s834_s21, 1  ;;  %p160_p8 = scmp.lt.s32.totalorder %s834_s21, 3 }
   0xc   : > { %p681_p9 = scmp.eq.s32.totalorder %s892_s22, 0  ;;  %s177_s7 = sshll.u32 %s1019_s3, 4  ;;  %s178_s7 = int_to_ptr.hbm [resolvable:$true] %s177_s7 }
   0xd   : > { %p161_p10 = pnand %p613_p7, %p160_p8  ;;  %s836_s8 = smov [#allocation2]  }
   0xe   : > { %s179_s9 = sshll.u32 %s836_s8, 4  ;;  %s837_s10 = smov 128   ;;  %s180_s9 = int_to_ptr.vmem [resolvable:$true] %s179_s9 }
   0xf   : > { %p673_p11 = pneg %p161_p10  ;;  %s838_s11 = smov 8  }
  0x10   : > { %207 = sbr.rel (%p161_p10) target bundleno = 585 (0x249), region = 40 }
  0x11   : > { %p674_p12 = pnand %p681_p9, %p673_p11 }
  0x13   : > { %676 = dma.hbm_to_vmem [thread:$0]  (!%p674_p12), %s178_s7, 4096, %s180_s9, [#allocation3], %s837_s10, %s837_s10, %s838_s11  }
  0x15   : > { %813 = dma.done.wait (%p681_p9), [#allocation3], 4096  }
  0x16   : > { %815 = vsyncadd (%p681_p9), [#allocation3], 4294963200  ;;  %s619_s12 = sshll.u32 %s892_s22, 2  ;;  %v249_v0 = vld [vmem:[%s1017_s1 + $0x10] sm:$0xff]  ;;  %v247_v1 = vld [vmem:[%s1017_s1] sm:$0xff]  ;;  %vm257_vm0 = vcmask 130048  }
  0x17   : > { %p237_p13 = scmp.lt.s32.totalorder %s619_s12, 7  ;;  %v250_v2 = vld [vmem:[%s1017_s1 + $0x18] sm:$0xff]  ;;  %284 = vmatpush.msra.mxu0 %v249_v0  ;;  %v248_v4 = vld [vmem:[%s1017_s1 + $0x8] sm:$0xff]  ;;  %v350_v7 = vld [vmem:[#allocation2 + $0x70] sm:$0xff]  ;;  %s788_s10 = scalar_lea.hbm %s1021_s5, 64 }
  0x18   : > { %313 = vmatpush.msra.mxu1 %v250_v2  ;;  %v351_v5 = vld [vmem:[#allocation2 + $0x78] sm:$0xff]  ;;  %v366_v8 = vld [vmem:[#allocation2 + $0xf0] sm:$0xff]  ;;  %v349_v9 = vld [vmem:[#allocation2 + $0x68] sm:$0xff] }
  0x19   : > { %s1029_s12 = smov (!%p237_p13, %s619_s12), 7  ;;  %285 = vmatpush.msra.mxu0 %v247_v1  ;;  %v367_v6 = vld [vmem:[#allocation2 + $0xf8] sm:$0xff]  ;;  %v365_v10 = vld [vmem:[#allocation2 + $0xe8] sm:$0xff]  ;;  %635 = vmatpush.msra.mxu2 %v351_v5  ;;  %v348_v11 = vld [vmem:[#allocation2 + $0x60] sm:$0xff] }
  0x1a   : > { %s620_s13 = sshll.u32 %s1029_s12, 3  ;;  %314 = vmatpush.msra.mxu1 %v248_v4  ;;  %651 = vmatpush.msra.mxu3 %v367_v6  ;;  %v364_v12 = vld [vmem:[#allocation2 + $0xe0] sm:$0xff]  ;;  %v347_v14 = vld [vmem:[#allocation2 + $0x58] sm:$0xff]  ;;  %v346_v16 = vld [vmem:[#allocation2 + $0x50] sm:$0xff] }
  0x1b   : > { %s933_s16 = scalar_lea.vmem %s1016_s0, %s620_s13  ;;  %372 = vmatpush.msrb.mxu0 %v351_v5  ;;  %636 = vmatpush.msra.mxu2 %v350_v7  ;;  %v363_v15 = vld [vmem:[#allocation2 + $0xd8] sm:$0xff]  ;;  %v362_v17 = vld [vmem:[#allocation2 + $0xd0] sm:$0xff]  ;;  %v345_v18 = vld [vmem:[#allocation2 + $0x48] sm:$0xff]  ;;  %s233_s13 = sand.u32 1, %s826_s19  }
  0x1c   : > { %v243_v3 = vld [vmem:[%s933_s16] sm:$0xff]  ;;  %401 = vmatpush.msrb.mxu1 %v367_v6  ;;  %652 = vmatpush.msra.mxu3 %v366_v8  ;;  %v244_v13 = vld [vmem:[%s933_s16 + $0x8] sm:$0xff]  ;;  %v245_v22 = vld [vmem:[%s933_s16 + $0x10] sm:$0xff]  ;;  %s618_s14 = sshll.u32 %s233_s13, 5  ;;  %s523_s30 = scalar_lea.sflag [#allocation4], %s233_s13 }
  0x1d   : > { %621 = vmatmul.msk.f32.vlgmr.msra.gmra.mxu0 %vm257_vm0, %v243_v3  ;;  %625 = vmatmul.msk.f32.vlgmr.msra.gmra.mxu1 %vm257_vm0, %v243_v3  ;;  %v361_v19 = vld [vmem:[#allocation2 + $0xc8] sm:$0xff]  ;;  %v344_v20 = vld [vmem:[#allocation2 + $0x40] sm:$0xff]  ;;  %v343_v23 = vld [vmem:[#allocation2 + $0x38] sm:$0xff]  ;;  %s974_s15 = scalar_lea.vmem [#allocation5], %s618_s14 }
  0x1e   : > { %373 = vmatpush.msrb.mxu0 %v350_v7  ;;  %402 = vmatpush.msrb.mxu1 %v366_v8  ;;  %v360_v21 = vld [vmem:[#allocation2 + $0xc0] sm:$0xff]  ;;  %v359_v24 = vld [vmem:[#allocation2 + $0xb8] sm:$0xff]  ;;  %v342_v25 = vld [vmem:[#allocation2 + $0x30] sm:$0xff]  ;;  %s535_s26 = sshll.u32 %s974_s15, 4  ;;  %s536_s26 = int_to_ptr.vmem [resolvable:$true] %s535_s26 }
  0x1f   : > { %637 = vmatpush.msra.mxu2 %v349_v9  ;;  %653 = vmatpush.msra.mxu3 %v365_v10  ;;  %v358_v26 = vld [vmem:[#allocation2 + $0xb0] sm:$0xff]  ;;  %v341_v27 = vld [vmem:[#allocation2 + $0x28] sm:$0xff]  ;;  %v340_v29 = vld [vmem:[#allocation2 + $0x20] sm:$0xff] }
  0x20   : > { %374 = vmatpush.msrb.mxu0 %v349_v9  ;;  %403 = vmatpush.msrb.mxu1 %v365_v10  ;;  %v357_v28 = vld [vmem:[#allocation2 + $0xa8] sm:$0xff]  ;;  %v356_v30 = vld [vmem:[#allocation2 + $0xa0] sm:$0xff]  ;;  %v246_v31 = vld [vmem:[%s933_s16 + $0x18] sm:$0xff]  ;;  %s634_s16 = sshll.u32 %s892_s22, 5 }
  0x21   : > { %638 = vmatpush.msra.mxu2 %v348_v11  ;;  %654 = vmatpush.msra.mxu3 %v364_v12  ;;  %v339_v32 = vld [vmem:[#allocation2 + $0x18] sm:$0xff]  ;;  %v338_v33 = vld [vmem:[#allocation2 + $0x10] sm:$0xff]  ;;  %v337_v35 = vld [vmem:[#allocation2 + $0x8] sm:$0xff]  ;;  %s534_s25 = scalar_lea.hbm %s1021_s5, %s634_s16 }
  0x22   : > { %375 = vmatpush.msrb.mxu0 %v348_v11  ;;  %404 = vmatpush.msrb.mxu1 %v364_v12  ;;  %v355_v34 = vld [vmem:[#allocation2 + $0x98] sm:$0xff]  ;;  %v354_v36 = vld [vmem:[#allocation2 + $0x90] sm:$0xff]  ;;  %v336_v37 = vld [vmem:[#allocation2] sm:$0xff]  ;;  %s537_s22 = sshll.u32 %s534_s25, 4  ;;  %s538_s22 = int_to_ptr.hbm [resolvable:$true] %s537_s22 }
  0x23   : > { %639 = vmatpush.msra.mxu2 %v347_v14  ;;  %655 = vmatpush.msra.mxu3 %v363_v15  ;;  %v353_v38 = vld [vmem:[#allocation2 + $0x88] sm:$0xff]  ;;  %v352_v39 = vld [vmem:[#allocation2 + $0x80] sm:$0xff]  ;;  %s782_s6 = sshra.s32 %s538_s22, 4  ;;  %s783_s6 = int_to_ptr.hbm [resolvable:$true] %s782_s6 }
  0x24   : > { %376 = vmatpush.msrb.mxu0 %v347_v14  ;;  %405 = vmatpush.msrb.mxu1 %v363_v15  ;;  %v251_v40 = vld [vmem:[%s1018_s2] sm:$0x3]  ;;  %s784_s7 = scalar_lea.hbm %s783_s6, 32  ;;  %p789_p3 = scmp.lt.s32.totalorder %s783_s6, %s1021_s5 }
  0x25   : > { %622 = vmatmul.msk.f32.gmra.mxu0 %vm257_vm0, %v244_v13  ;;  %626 = vmatmul.msk.f32.gmra.mxu1 %vm257_vm0, %v244_v13  ;;  %v253_v41 = vperm.slane %v251_v40, 0  ;;  %v254_v42 = vperm.slane %v251_v40, 1  ;;  %v721_v3 = vld [vmem:[%s1020_s4] ss:$0 sm:$0xff]  ;;  %p785_p0 = scmp.ne.s32.totalorder %s783_s6, %s784_s7  ;;  %p790_p4 = scmp.lt.s32.totalorder %s788_s10, %s784_s7 }
  0x26   : > { %377 = vmatpush.msrb.mxu0 %v346_v16  ;;  %406 = vmatpush.msrb.mxu1 %v362_v17 }
  0x27   : > { %640 = vmatpush.msra.mxu2 %v346_v16  ;;  %656 = vmatpush.msra.mxu3 %v362_v17  ;;  %p786_p1 = pnand %p785_p0, %p909_p5  ;;  %p791_p7 = por %p790_p4, %p789_p3 }
  0x28   : > { %378 = vmatpush.msrb.mxu0 %v345_v18  ;;  %407 = vmatpush.msrb.mxu1 %v361_v19 }
  0x29   : > { %641 = vmatpush.msra.mxu2 %v345_v18  ;;  %657 = vmatpush.msra.mxu3 %v361_v19  ;;  %p787_p2 = pneg %p786_p1 }
  0x2a   : > { %379 = vmatpush.msrb.mxu0 %v344_v20  ;;  %408 = vmatpush.msrb.mxu1 %v360_v21 }
  0x2b   : > { %642 = vmatpush.msra.mxu2 %v344_v20  ;;  %658 = vmatpush.msra.mxu3 %v360_v21  ;;  %p792_p8 = pnand %p791_p7, %p787_p2 }
  0x2c   : > { %380 = vmatpush.msrb.mxu0 %v343_v23  ;;  %409 = vmatpush.msrb.mxu1 %v359_v24 }
  0x2d   : > { %623 = vmatmul.msk.f32.gmra.mxu0 %vm257_vm0, %v245_v22  ;;  %627 = vmatmul.msk.f32.gmra.mxu1 %vm257_vm0, %v245_v22 }
  0x2e   : > { %381 = vmatpush.msrb.mxu0 %v342_v25  ;;  %410 = vmatpush.msrb.mxu1 %v358_v26 }
  0x2f   : > { %643 = vmatpush.msra.mxu2 %v343_v23  ;;  %659 = vmatpush.msra.mxu3 %v359_v24 }
  0x30   : > { %382 = vmatpush.msrb.mxu0 %v341_v27  ;;  %411 = vmatpush.msrb.mxu1 %v357_v28 }
  0x31   : > { %644 = vmatpush.msra.mxu2 %v342_v25  ;;  %660 = vmatpush.msra.mxu3 %v358_v26 }
  0x32   : > { %383 = vmatpush.msrb.mxu0 %v340_v29  ;;  %412 = vmatpush.msrb.mxu1 %v356_v30 }
  0x33   : > { %645 = vmatpush.msra.mxu2 %v341_v27  ;;  %661 = vmatpush.msra.mxu3 %v357_v28 }
  0x34   : > { %384 = vmatpush.msrb.mxu0 %v339_v32  ;;  %413 = vmatpush.msrb.mxu1 %v355_v34 }
  0x35   : > { %624 = vmatmul.msk.f32.gmra.mxu0 %vm257_vm0, %v246_v31  ;;  %628 = vmatmul.msk.f32.gmra.mxu1 %vm257_vm0, %v246_v31 }
  0x36   : > { %646 = vmatpush.msra.mxu2 %v340_v29  ;;  %662 = vmatpush.msra.mxu3 %v356_v30 }
  0x37   : > { %385 = vmatpush.msrb.mxu0 %v338_v33  ;;  %414 = vmatpush.msrb.mxu1 %v354_v36 }
  0x38   : > { %647 = vmatpush.msra.mxu2 %v339_v32  ;;  %663 = vmatpush.msra.mxu3 %v355_v34 }
  0x39   : > { %386 = vmatpush.msrb.mxu0 %v337_v35  ;;  %415 = vmatpush.msrb.mxu1 %v353_v38 }
  0x3a   : > { %648 = vmatpush.msra.mxu2 %v338_v33  ;;  %664 = vmatpush.msra.mxu3 %v354_v36 }
  0x3b   : > { %387 = vmatpush.msrb.mxu0 %v336_v37  ;;  %416 = vmatpush.msrb.mxu1 %v352_v39 }
  0x3c   : > { %649 = vmatpush.msra.mxu2 %v337_v35  ;;  %665 = vmatpush.msra.mxu3 %v353_v38 }
  0x3e   : > { %650 = vmatpush.msra.mxu2 %v336_v37  ;;  %666 = vmatpush.msra.mxu3 %v352_v39 }
  0x9a   : > { %v287_v43 = vpop.f32.mrf.mxu0  ;;  %v316_v44 = vpop.f32.mrf.mxu1 }
  0x9b   : > { %v288_v45 = vadd.f32 %v287_v43, %v253_v41  ;;  %v317_v46 = vadd.f32 %v316_v44, %v254_v42 }
  0x9d   : > { %v328_v47 = vmax.f32 %v288_v45, 0.0  ;;  %v329_v48 = vmax.f32 %v317_v46, 0.0 }
  0x9f   : > { %388 = vmatmul.f32.vlgmr.msrb.gmra.mxu0 %v328_v47  ;;  %417 = vmatmul.f32.vlgmr.msrb.gmra.mxu1 %v329_v48 }
  0xa2   : > { %v290_v49 = vpop.f32.mrf.mxu0  ;;  %v319_v50 = vpop.f32.mrf.mxu1 }
  0xa3   : > { %v291_v51 = vadd.f32 %v290_v49, %v253_v41  ;;  %v320_v52 = vadd.f32 %v319_v50, %v254_v42 }
  0xa5   : > { %v330_v53 = vmax.f32 %v291_v51, 0.0  ;;  %v331_v54 = vmax.f32 %v320_v52, 0.0 }
  0xa7   : > { %391 = vmatmul.f32.vlgmr.msra.gmra.mxu2 %v330_v53  ;;  %420 = vmatmul.f32.vlgmr.msra.gmra.mxu3 %v331_v54 }
  0xaa   : > { %v293_v55 = vpop.f32.mrf.mxu0  ;;  %v322_v56 = vpop.f32.mrf.mxu1 }
  0xab   : > { %v294_v57 = vadd.f32 %v293_v55, %v253_v41  ;;  %v323_v58 = vadd.f32 %v322_v56, %v254_v42 }
  0xad   : > { %v332_v59 = vmax.f32 %v294_v57, 0.0  ;;  %v333_v60 = vmax.f32 %v323_v58, 0.0 }
  0xaf   : > { %394 = vmatmul.f32.gmra.mxu2 %v332_v59  ;;  %423 = vmatmul.f32.gmra.mxu3 %v333_v60 }
  0xb2   : > { %v296_v61 = vpop.f32.mrf.mxu0  ;;  %v325_v62 = vpop.f32.mrf.mxu1 }
  0xb3   : > { %v297_v63 = vadd.f32 %v296_v61, %v253_v41  ;;  %v326_v0 = vadd.f32 %v325_v62, %v254_v42 }
  0xb5   : > { %v334_v1 = vmax.f32 %v297_v63, 0.0  ;;  %v335_v2 = vmax.f32 %v326_v0, 0.0 }
  0xb7   : > { %397 = vmatmul.f32.gmra.mxu2 %v334_v1  ;;  %426 = vmatmul.f32.gmra.mxu3 %v335_v2 }
 0x11c   : > { %v389_v4 = vpop.f32.mrf.mxu0  ;;  %v418_v5 = vpop.f32.mrf.mxu1 }
 0x11d   : > { %v390_v6 = vadd.f32 %v721_v3, %v389_v4 }
 0x11f   : > { %v419_v7 = vadd.f32 %v418_v5, %v390_v6 }
 0x121   : > { %430 = vmax.xlane.f32.xlu0 %v419_v7 }
 0x12a   : > { %v392_v8 = vpop.f32.mrf.mxu2  ;;  %v421_v9 = vpop.f32.mrf.mxu3 }
 0x12b   : > { %v393_v10 = vadd.f32 %v721_v3, %v392_v8 }
 0x12d   : > { %v422_v11 = vadd.f32 %v421_v9, %v393_v10 }
 0x12f   : > { %432 = vmax.xlane.f32.xlu0 %v422_v11 }
 0x132   : > { %v395_v12 = vpop.f32.mrf.mxu2  ;;  %v424_v13 = vpop.f32.mrf.mxu3 }
 0x133   : > { %v396_v14 = vadd.f32 %v721_v3, %v395_v12 }
 0x135   : > { %v425_v15 = vadd.f32 %v424_v13, %v396_v14 }
 0x137   : > { %434 = vmax.xlane.f32.xlu1 %v425_v15 }
 0x13a   : > { %v398_v16 = vpop.f32.mrf.mxu2  ;;  %v427_v17 = vpop.f32.mrf.mxu3 }
 0x13b   : > { %v399_v18 = vadd.f32 %v721_v3, %v398_v16 }
 0x13d   : > { %v428_v19 = vadd.f32 %v427_v17, %v399_v18 }
 0x13f   : > { %436 = vmax.xlane.f32.xlu1 %v428_v19 }
 0x194   : > { %v431_v20 = vpop.xlane.xlu0 %430 }
 0x195   : > { %v438_v21 = vsub.f32 %v419_v7, %v431_v20 }
 0x197   : > { %v442_v22 = vmul.f32 1.442695, %v438_v21 }
 0x199   : > { %722 = vpow2.f32 %v442_v22 }
 0x19f   : > { %v723_v23 = vpop.eup %722 }
 0x1a0   : > { %450 = vadd.xlane.f32.xlu2 %v723_v23 }
 0x1a2   : > { %v433_v24 = vpop.xlane.xlu0 %432 }
 0x1a3   : > { %v439_v25 = vsub.f32 %v422_v11, %v433_v24 }
 0x1a5   : > { %v444_v26 = vmul.f32 1.442695, %v439_v25 }
 0x1a7   : > { %724 = vpow2.f32 %v444_v26 }
 0x1aa   : > { %v435_v27 = vpop.xlane.xlu1 %434 }
 0x1ab   : > { %v440_v28 = vsub.f32 %v425_v15, %v435_v27 }
 0x1ad   : > { %v725_v29 = vpop.eup %724  ;;  %v446_v30 = vmul.f32 1.442695, %v440_v28 }
 0x1ae   : > { %452 = vadd.xlane.f32.xlu2 %v725_v29 }
 0x1af   : > { %726 = vpow2.f32 %v446_v30 }
 0x1b2   : > { %v437_v31 = vpop.xlane.xlu1 %436 }
 0x1b3   : > { %v441_v32 = vsub.f32 %v428_v19, %v437_v31 }
 0x1b5   : > { %v965_v33 = vpop.eup %726  ;;  %v448_v34 = vmul.f32 1.442695, %v441_v32 }
 0x1b6   : > { %454 = vadd.xlane.f32.xlu0 %v965_v33 }
 0x1b7   : > { %728 = vpow2.f32 %v448_v34 }
 0x1bd   : > { %v968_v35 = vpop.eup %728 }
 0x1be   : > { %456 = vadd.xlane.f32.xlu1 %v968_v35 }
 0x213   : > { %v451_v36 = vpop.xlane.xlu2 %450 }
 0x214   : > { %730 = vrcp.f32 %v451_v36  ;;  %v469_v40 = vand.u32 2147483648, %v451_v36  ;;  %v467_v42 = vand.u32 2147483647, %v451_v36  ;;  %vm463_vm2 = vweird.f32 %v451_v36 }
 0x216   : > { %v470_v45 = vor.u32 1.1754944e-38, %v469_v40  ;;  %vm468_vm4 = vcmp.eq.f32.partialorder %v467_v42, 8.507059e+37 }
 0x21a   : > { %v731_v37 = vpop.eup %730 }
 0x21b   : > { %v459_v38 = vmul.f32 %v731_v37, %v451_v36  ;;  %vm464_vm1 = vweird.f32 %v731_v37 }
 0x21c   : > { %vm465_vm3 = vmor %vm463_vm2, %vm464_vm1 }
 0x21d   : > { %v460_v39 = vsub.f32 1.0, %v459_v38 }
 0x21f   : > { %v461_v41 = vmul.f32 %v731_v37, %v460_v39 }
 0x221   : > { %v462_v43 = vadd.f32 %v731_v37, %v461_v41  ;;  %v453_v44 = vpop.xlane.xlu2 %452 }
 0x222   : > { %732 = vrcp.f32 %v453_v44  ;;  %v484_v53 = vand.u32 2147483648, %v453_v44  ;;  %v482_v55 = vand.u32 2147483647, %v453_v44  ;;  %vm478_vm6 = vweird.f32 %v453_v44 }
 0x223   : > { %v466_v46 = vsel %vm465_vm3, %v731_v37, %v462_v43 }
 0x224   : > { %v471_v47 = vsel %vm468_vm4, %v470_v45, %v466_v46  ;;  %v485_v58 = vor.u32 1.1754944e-38, %v484_v53  ;;  %vm483_vm8 = vcmp.eq.f32.partialorder %v482_v55, 8.507059e+37 }
 0x225   : > { %v472_v48 = vmul.f32 %v723_v23, %v471_v47 }
 0x227   : > { %518 = vst [vmem:[%s974_s15] sm:$0xff] %v472_v48 }
 0x228   : > { %v733_v49 = vpop.eup %732 }
 0x229   : > { %v474_v50 = vmul.f32 %v733_v49, %v453_v44  ;;  %v455_v51 = vpop.xlane.xlu0 %454  ;;  %vm479_vm5 = vweird.f32 %v733_v49 }
 0x22a   : > { %734 = vrcp.f32 %v455_v51  ;;  %vm480_vm7 = vmor %vm478_vm6, %vm479_vm5  ;;  %v499_v1 = vand.u32 2147483648, %v455_v51  ;;  %v497_v3 = vand.u32 2147483647, %v455_v51  ;;  %vm493_vm10 = vweird.f32 %v455_v51 }
 0x22b   : > { %v475_v52 = vsub.f32 1.0, %v474_v50 }
 0x22c   : > { %v500_v6 = vor.u32 1.1754944e-38, %v499_v1  ;;  %vm498_vm12 = vcmp.eq.f32.partialorder %v497_v3, 8.507059e+37 }
 0x22d   : > { %v476_v54 = vmul.f32 %v733_v49, %v475_v52 }
 0x22f   : > { %v477_v56 = vadd.f32 %v733_v49, %v476_v54 }
 0x230   : > { %v735_v57 = vpop.eup %734 }
 0x231   : > { %v481_v59 = vsel %vm480_vm7, %v733_v49, %v477_v56  ;;  %v489_v60 = vmul.f32 %v735_v57, %v455_v51  ;;  %v457_v61 = vpop.xlane.xlu1 %456  ;;  %vm494_vm9 = vweird.f32 %v735_v57 }
 0x232   : > { %v486_v62 = vsel %vm483_vm8, %v485_v58, %v481_v59  ;;  %736 = vrcp.f32 %v457_v61  ;;  %vm495_vm11 = vmor %vm493_vm10, %vm494_vm9  ;;  %v514_v12 = vand.u32 2147483648, %v457_v61  ;;  %v512_v14 = vand.u32 2147483647, %v457_v61 }
 0x233   : > { %v487_v63 = vmul.f32 %v725_v29, %v486_v62  ;;  %v490_v0 = vsub.f32 1.0, %v489_v60  ;;  %vm508_vm14 = vweird.f32 %v457_v61 }
 0x234   : > { %v515_v16 = vor.u32 1.1754944e-38, %v514_v12  ;;  %vm513_vm0 = vcmp.eq.f32.partialorder %v512_v14, 8.507059e+37 }
 0x235   : > { %519 = vst [vmem:[%s974_s15 + $0x8] sm:$0xff] %v487_v63  ;;  %v491_v2 = vmul.f32 %v735_v57, %v490_v0 }
 0x237   : > { %v492_v4 = vadd.f32 %v735_v57, %v491_v2 }
 0x238   : > { %v737_v5 = vpop.eup %736 }
 0x239   : > { %v496_v7 = vsel %vm495_vm11, %v735_v57, %v492_v4  ;;  %v504_v8 = vmul.f32 %v737_v5, %v457_v61  ;;  %vm509_vm13 = vweird.f32 %v737_v5 }
 0x23a   : > { %v501_v9 = vsel %vm498_vm12, %v500_v6, %v496_v7  ;;  %vm510_vm15 = vmor %vm508_vm14, %vm509_vm13 }
 0x23b   : > { %v502_v10 = vmul.f32 %v965_v33, %v501_v9  ;;  %v505_v11 = vsub.f32 1.0, %v504_v8 }
 0x23d   : > { %520 = vst [vmem:[%s974_s15 + $0x10] sm:$0xff] %v502_v10  ;;  %v506_v13 = vmul.f32 %v737_v5, %v505_v11 }
 0x23f   : > { %v507_v15 = vadd.f32 %v737_v5, %v506_v13 }
 0x241   : > { %v511_v17 = vsel %vm510_vm15, %v737_v5, %v507_v15 }
 0x242   : > { %v516_v18 = vsel %vm513_vm0, %v515_v16, %v511_v17 }
 0x243   : > { %v517_v19 = vmul.f32 %v968_v35, %v516_v18 }
 0x245   : > { %521 = vst [vmem:[%s974_s15 + $0x18] sm:$0xff] %v517_v19 }
 0x246   : > { %795 = shalt.err (!%p792_p8)
}
 0x247   : > { %s839_s13 = smov 128   ;;  %s840_s14 = smov 8  }
 0x248   : > { %671 = dma.vmem_to_hbm [thread:$0]  (%p909_p5), %s536_s26, 512, %s538_s22, %s523_s30, %s839_s13, %s839_s13, %s840_s14  }
 0x249 PF: > { %p683_p9 = scmp.ge.s32.totalorder %s834_s21, 2  ;;  %s552_s15 = sand.u32 1, %s822_s18  }
 0x24a   : > { %s553_s16 = scalar_lea.sflag [#allocation4], %s552_s15 }
 0x24b   : > { %p678_p10 = pnand %p683_p9, %p913_p6 }
 0x24d   : > { %p679_p11 = pneg %p678_p10 }
 0x24f   : > { %817 = dma.done.wait (%p679_p11), %s553_s16, 512  }
 0x250   : > { %819 = vsyncadd (%p679_p11), %s553_s16, 4294966784  ;;  %p16_p12 = scmp.ge.s32.totalorder %s896_s24, 4   ;;  %s1024_s18 = smov %s826_s19 }
 0x251   : > { %s1025_s19 = smov %s830_s20  ;;  %s1026_s20 = smov %s907_s27 }
 0x252   : > { %s1027_s21 = smov %s896_s24  ;;  %18 = sbr.rel (!%p16_p12) target bundleno = 4 (0x4), region = 80 }
 0x257   :  { %559 = vsyncpa [#allocation3], 1 }
 0x258   :  { %561 = vsyncpa [#allocation3 + $0x1], 1 }
 0x259   :  { %562 = vsyncpa [#allocation4], 1 }
 0x25a   :  { %564 = vsyncpa [#allocation4 + $0x1], 1 }

</bundles_post_ra>
